<compile_context>
chip_gen: v5e
topology: v5e:2x2
jax: 0.10.0
libtpu: 0.0.40
codegen_flags: <defaults>
</compile_context>

<pallas_src>
import jax
import jax.numpy as jnp
from jax.experimental import pallas as pl
from jax.experimental.pallas import tpu as pltpu


def mlp_kernel(x_ref, w1_ref, b1_ref, w2_ref, b2_ref, w3_ref, b3_ref,
               w4_ref, b4_ref, o_ref):
    # Layers 1-3: Linear (bf16 operands, f32 MXU accumulation) + ReLU in f32.
    # x arrives in its original dtype; cast to bf16 here (avoids a separate
    # XLA read-f32/write-bf16 pass over x in the wrapper).
    h = jnp.dot(x_ref[...].astype(jnp.bfloat16), w1_ref[...],
                preferred_element_type=jnp.float32)
    h = jnp.maximum(h + b1_ref[...], 0.0)
    h = jnp.dot(h.astype(jnp.bfloat16), w2_ref[...],
                preferred_element_type=jnp.float32)
    h = jnp.maximum(h + b2_ref[...], 0.0)
    h = jnp.dot(h.astype(jnp.bfloat16), w3_ref[...],
                preferred_element_type=jnp.float32)
    h = jnp.maximum(h + b3_ref[...], 0.0)
    # Layer 4: Linear + sigmoid. Single EUP push (tanh), numerically stable,
    # no approximate reciprocal.
    z = jnp.dot(h.astype(jnp.bfloat16), w4_ref[...],
                preferred_element_type=jnp.float32) + b4_ref[...]
    o_ref[...] = (0.5 * jnp.tanh(0.5 * z) + 0.5).astype(o_ref.dtype)


def _round_up(n, m):
    return ((n + m - 1) // m) * m


def _choose_batch_tile(B, block_b):
    """Largest tile <= block_b, multiple of 8, with grid >= 2 when B allows it
    (so v7x's two TensorCores both get work via the 'parallel' batch axis)."""
    tb = min(block_b, _round_up(B, 8))
    if B > 8:
        tb = min(tb, _round_up(pl.cdiv(B, 2), 8))
    return max(tb, 8)


def mlp_forward(x, params, *, block_b=2048, out_dtype=jnp.bfloat16):
    """x: (B, num_input) float. params: 4x (W_(in,out) bf16, b_(1,out) f32).

    Returns (B, num_output) in `out_dtype` (bf16 by default: the lane-padded
    output is the dominant HBM stream, bf16 halves the writeback)."""
    (w1, b1), (w2, b2), (w3, b3), (w4, b4) = params
    B, num_input = x.shape
    h1, h2, h3 = w1.shape[1], w2.shape[1], w3.shape[1]
    num_output = w4.shape[1]

    # Lane-dense output: pad the output feature dim up to a multiple of 128 so
    # the writeback uses unmasked full-width vector stores; sliced off below.
    out_pad = _round_up(num_output, 128)
    if out_pad != num_output:
        w4p = jnp.zeros((h3, out_pad), w4.dtype).at[:, :num_output].set(w4)
        b4p = jnp.zeros((1, out_pad), b4.dtype).at[:, :num_output].set(b4)
    else:
        w4p, b4p = w4, b4

    # Batch tile: as large as possible (per-step overhead amortization) while
    # keeping >= 2 grid steps for the v7x megacore split. No explicit batch
    # padding of x: Pallas clips the final partial block (OOB output rows are
    # dropped; OOB input rows are garbage but purely per-row, sliced off).
    tb = _choose_batch_tile(B, block_b)
    grid = (pl.cdiv(B, tb),)

    out = pl.pallas_call(
        mlp_kernel,
        out_shape=jax.ShapeDtypeStruct((B, out_pad), out_dtype),
        grid_spec=pltpu.PrefetchScalarGridSpec(
            num_scalar_prefetch=0,
            grid=grid,
            in_specs=[
                pl.BlockSpec((tb, num_input), lambda i: (i, 0)),   # x: blocked over batch
                pl.BlockSpec((num_input, h1), lambda i: (0, 0)),   # weights/biases stay
                pl.BlockSpec((1, h1), lambda i: (0, 0)),           # VMEM-resident across
                pl.BlockSpec((h1, h2), lambda i: (0, 0)),          # grid steps
                pl.BlockSpec((1, h2), lambda i: (0, 0)),
                pl.BlockSpec((h2, h3), lambda i: (0, 0)),
                pl.BlockSpec((1, h3), lambda i: (0, 0)),
                pl.BlockSpec((h3, out_pad), lambda i: (0, 0)),
                pl.BlockSpec((1, out_pad), lambda i: (0, 0)),
            ],
            out_specs=pl.BlockSpec((tb, out_pad), lambda i: (i, 0)),
        ),
        compiler_params=pltpu.CompilerParams(
            dimension_semantics=("parallel",)),  # shard batch grid across v7x's 2 TCs
    )(x, w1, b1, w2, b2, w3, b3, w4p, b4p)

    return out[:, :num_output]


def init_linear(key, fan_in, fan_out):
    # Mimics torch.nn.Linear's uniform(-1/sqrt(fan_in), 1/sqrt(fan_in)) init.
    kw, kb = jax.random.split(key)
    bound = 1.0 / jnp.sqrt(jnp.float32(fan_in))
    w = jax.random.uniform(kw, (fan_in, fan_out), jnp.float32, -bound, bound)
    b = jax.random.uniform(kb, (1, fan_out), jnp.float32, -bound, bound)
    return w.astype(jnp.bfloat16), b  # weights bf16 (MXU-native), bias f32


if __name__ == "__main__":
    # Module(num_input, num_hiddles1, num_hiddles2, num_hiddles3, num_output)
    num_input, h1, h2, h3, num_output = 32, 64, 64, 32, 8
    batch = 500  # not a multiple of the tile -> exercises the clipped final block

    key = jax.random.PRNGKey(0)
    k_x, k1, k2, k3, k4 = jax.random.split(key, 5)

    params = (
        init_linear(k1, num_input, h1),
        init_linear(k2, h1, h2),
        init_linear(k3, h2, h3),
        init_linear(k4, h3, num_output),
    )
    x = jax.random.normal(k_x, (batch, num_input), jnp.float32)

    out = mlp_forward(x, params)
    jax.block_until_ready(out)

    # Reference in plain JAX with the same bf16 operand / f32 accumulation math.
    def ref(x, params):
        (w1, b1), (w2, b2), (w3, b3), (w4, b4) = params
        a = x.astype(jnp.bfloat16)
        a = jnp.maximum(jnp.dot(a, w1, preferred_element_type=jnp.float32) + b1, 0.0)
        a = jnp.maximum(jnp.dot(a.astype(jnp.bfloat16), w2,
                                preferred_element_type=jnp.float32) + b2, 0.0)
        a = jnp.maximum(jnp.dot(a.astype(jnp.bfloat16), w3,
                                preferred_element_type=jnp.float32) + b3, 0.0)
        z = jnp.dot(a.astype(jnp.bfloat16), w4,
                    preferred_element_type=jnp.float32) + b4
        return jax.nn.sigmoid(z)

    ref_out = ref(x, params)
    assert out.shape == (batch, num_output)
    # Error budget is dominated by the bf16 output cast (~2^-9 abs on [0,1]).
    err = jnp.max(jnp.abs(out.astype(jnp.float32) - ref_out))
    assert jnp.allclose(out.astype(jnp.float32), ref_out, atol=1e-2, rtol=1e-2), float(err)
    print("KERNEL_OK")
</pallas_src>

<mosaic_0001>
module attributes {stable_mosaic.version = 11 : i64} {
  func.func @mlp_kernel(%arg0: i32, %arg1: memref<256x32xf32, #tpu.memory_space<vmem>>, %arg2: memref<32x64xbf16, #tpu.memory_space<vmem>>, %arg3: memref<1x64xf32, #tpu.memory_space<vmem>>, %arg4: memref<64x64xbf16, #tpu.memory_space<vmem>>, %arg5: memref<1x64xf32, #tpu.memory_space<vmem>>, %arg6: memref<64x32xbf16, #tpu.memory_space<vmem>>, %arg7: memref<1x32xf32, #tpu.memory_space<vmem>>, %arg8: memref<32x128xbf16, #tpu.memory_space<vmem>>, %arg9: memref<1x128xf32, #tpu.memory_space<vmem>>, %arg10: memref<256x128xbf16, #tpu.memory_space<vmem>>) attributes {dimension_semantics = [#tpu.dimension_semantics<parallel>], iteration_bounds = array<i64: 2>, scalar_prefetch = 0 : i64, scratch_operands = 0 : i64, tpu.core_type = #tpu.core_type<tc>, window_params = [{transform_indices = @transform_0, window_bounds = array<i64: 256, 32>}, {pipeline_mode = #tpu.pipeline_mode<synchronous>, transform_indices = @transform_1, window_bounds = array<i64: 32, 64>}, {pipeline_mode = #tpu.pipeline_mode<synchronous>, transform_indices = @transform_2, window_bounds = array<i64: 1, 64>}, {pipeline_mode = #tpu.pipeline_mode<synchronous>, transform_indices = @transform_3, window_bounds = array<i64: 64, 64>}, {pipeline_mode = #tpu.pipeline_mode<synchronous>, transform_indices = @transform_4, window_bounds = array<i64: 1, 64>}, {pipeline_mode = #tpu.pipeline_mode<synchronous>, transform_indices = @transform_5, window_bounds = array<i64: 64, 32>}, {pipeline_mode = #tpu.pipeline_mode<synchronous>, transform_indices = @transform_6, window_bounds = array<i64: 1, 32>}, {pipeline_mode = #tpu.pipeline_mode<synchronous>, transform_indices = @transform_7, window_bounds = array<i64: 32, 128>}, {pipeline_mode = #tpu.pipeline_mode<synchronous>, transform_indices = @transform_8, window_bounds = array<i64: 1, 128>}, {transform_indices = @transform_9, window_bounds = array<i64: 256, 128>}]} {
    %c0 = arith.constant 0 : index
    %c0_0 = arith.constant 0 : index
    %0 = vector.load %arg1[%c0, %c0_0] : memref<256x32xf32, #tpu.memory_space<vmem>>, vector<256x32xf32>
    %1 = arith.truncf %0 : vector<256x32xf32> to vector<256x32xbf16>
    %c0_1 = arith.constant 0 : index
    %c0_2 = arith.constant 0 : index
    %2 = vector.load %arg2[%c0_1, %c0_2] : memref<32x64xbf16, #tpu.memory_space<vmem>>, vector<32x64xbf16>
    %cst = arith.constant dense<0.000000e+00> : vector<256x64xf32>
    %3 = tpu.matmul %1, %2, %cst {dimension_numbers = #tpu.dot_dimension_numbers<[1], [0], [0], [1], [0, 0, 1, 1], [], []>} : vector<256x32xbf16>, vector<32x64xbf16>, vector<256x64xf32> -> vector<256x64xf32>
    %c0_3 = arith.constant 0 : index
    %c0_4 = arith.constant 0 : index
    %4 = vector.load %arg3[%c0_3, %c0_4] : memref<1x64xf32, #tpu.memory_space<vmem>>, vector<1x64xf32>
    %5 = vector.broadcast %4 : vector<1x64xf32> to vector<256x64xf32>
    %6 = arith.addf %3, %5 : vector<256x64xf32>
    %cst_5 = arith.constant 0.000000e+00 : f32
    %7 = vector.broadcast %cst_5 : f32 to vector<256x64xf32>
    %8 = arith.maximumf %6, %7 : vector<256x64xf32>
    %9 = arith.truncf %8 : vector<256x64xf32> to vector<256x64xbf16>
    %c0_6 = arith.constant 0 : index
    %c0_7 = arith.constant 0 : index
    %10 = vector.load %arg4[%c0_6, %c0_7] : memref<64x64xbf16, #tpu.memory_space<vmem>>, vector<64x64xbf16>
    %cst_8 = arith.constant dense<0.000000e+00> : vector<256x64xf32>
    %11 = tpu.matmul %9, %10, %cst_8 {dimension_numbers = #tpu.dot_dimension_numbers<[1], [0], [0], [1], [0, 0, 1, 1], [], []>} : vector<256x64xbf16>, vector<64x64xbf16>, vector<256x64xf32> -> vector<256x64xf32>
    %c0_9 = arith.constant 0 : index
    %c0_10 = arith.constant 0 : index
    %12 = vector.load %arg5[%c0_9, %c0_10] : memref<1x64xf32, #tpu.memory_space<vmem>>, vector<1x64xf32>
    %13 = vector.broadcast %12 : vector<1x64xf32> to vector<256x64xf32>
    %14 = arith.addf %11, %13 : vector<256x64xf32>
    %cst_11 = arith.constant 0.000000e+00 : f32
    %15 = vector.broadcast %cst_11 : f32 to vector<256x64xf32>
    %16 = arith.maximumf %14, %15 : vector<256x64xf32>
    %17 = arith.truncf %16 : vector<256x64xf32> to vector<256x64xbf16>
    %c0_12 = arith.constant 0 : index
    %c0_13 = arith.constant 0 : index
    %18 = vector.load %arg6[%c0_12, %c0_13] : memref<64x32xbf16, #tpu.memory_space<vmem>>, vector<64x32xbf16>
    %cst_14 = arith.constant dense<0.000000e+00> : vector<256x32xf32>
    %19 = tpu.matmul %17, %18, %cst_14 {dimension_numbers = #tpu.dot_dimension_numbers<[1], [0], [0], [1], [0, 0, 1, 1], [], []>} : vector<256x64xbf16>, vector<64x32xbf16>, vector<256x32xf32> -> vector<256x32xf32>
    %c0_15 = arith.constant 0 : index
    %c0_16 = arith.constant 0 : index
    %20 = vector.load %arg7[%c0_15, %c0_16] : memref<1x32xf32, #tpu.memory_space<vmem>>, vector<1x32xf32>
    %21 = vector.broadcast %20 : vector<1x32xf32> to vector<256x32xf32>
    %22 = arith.addf %19, %21 : vector<256x32xf32>
    %cst_17 = arith.constant 0.000000e+00 : f32
    %23 = vector.broadcast %cst_17 : f32 to vector<256x32xf32>
    %24 = arith.maximumf %22, %23 : vector<256x32xf32>
    %25 = arith.truncf %24 : vector<256x32xf32> to vector<256x32xbf16>
    %c0_18 = arith.constant 0 : index
    %c0_19 = arith.constant 0 : index
    %26 = vector.load %arg8[%c0_18, %c0_19] : memref<32x128xbf16, #tpu.memory_space<vmem>>, vector<32x128xbf16>
    %cst_20 = arith.constant dense<0.000000e+00> : vector<256x128xf32>
    %27 = tpu.matmul %25, %26, %cst_20 {dimension_numbers = #tpu.dot_dimension_numbers<[1], [0], [0], [1], [0, 0, 1, 1], [], []>} : vector<256x32xbf16>, vector<32x128xbf16>, vector<256x128xf32> -> vector<256x128xf32>
    %c0_21 = arith.constant 0 : index
    %c0_22 = arith.constant 0 : index
    %28 = vector.load %arg9[%c0_21, %c0_22] : memref<1x128xf32, #tpu.memory_space<vmem>>, vector<1x128xf32>
    %29 = vector.broadcast %28 : vector<1x128xf32> to vector<256x128xf32>
    %30 = arith.addf %27, %29 : vector<256x128xf32>
    %cst_23 = arith.constant 5.000000e-01 : f32
    %31 = vector.broadcast %cst_23 : f32 to vector<256x128xf32>
    %32 = arith.mulf %31, %30 : vector<256x128xf32>
    %33 = math.tanh %32 : vector<256x128xf32>
    %cst_24 = arith.constant 5.000000e-01 : f32
    %34 = vector.broadcast %cst_24 : f32 to vector<256x128xf32>
    %35 = arith.mulf %34, %33 : vector<256x128xf32>
    %cst_25 = arith.constant 5.000000e-01 : f32
    %36 = vector.broadcast %cst_25 : f32 to vector<256x128xf32>
    %37 = arith.addf %35, %36 : vector<256x128xf32>
    %38 = arith.truncf %37 : vector<256x128xf32> to vector<256x128xbf16>
    %c0_26 = arith.constant 0 : index
    %c0_27 = arith.constant 0 : index
    %39 = vector.load %arg10[%c0_26, %c0_27] : memref<256x128xbf16, #tpu.memory_space<vmem>>, vector<256x128xbf16>
    tpu.vector_store %arg10[%c0_26, %c0_27], %38 {strides = array<i32>} : memref<256x128xbf16, #tpu.memory_space<vmem>>, vector<256x128xbf16>,
    return
  }
  func.func @transform_0(%arg0: i32) -> (i32, i32) {
    %c0_i32 = arith.constant 0 : i32
    %c0_i32_0 = arith.constant 0 : i32
    return %arg0, %c0_i32 : i32, i32
  }
  func.func @transform_1(%arg0: i32) -> (i32, i32) {
    %c0_i32 = arith.constant 0 : i32
    %c0_i32_0 = arith.constant 0 : i32
    %c0_i32_1 = arith.constant 0 : i32
    return %c0_i32, %c0_i32_0 : i32, i32
  }
  func.func @transform_2(%arg0: i32) -> (i32, i32) {
    %c0_i32 = arith.constant 0 : i32
    %c0_i32_0 = arith.constant 0 : i32
    %c0_i32_1 = arith.constant 0 : i32
    return %c0_i32, %c0_i32_0 : i32, i32
  }
  func.func @transform_3(%arg0: i32) -> (i32, i32) {
    %c0_i32 = arith.constant 0 : i32
    %c0_i32_0 = arith.constant 0 : i32
    %c0_i32_1 = arith.constant 0 : i32
    return %c0_i32, %c0_i32_0 : i32, i32
  }
  func.func @transform_4(%arg0: i32) -> (i32, i32) {
    %c0_i32 = arith.constant 0 : i32
    %c0_i32_0 = arith.constant 0 : i32
    %c0_i32_1 = arith.constant 0 : i32
    return %c0_i32, %c0_i32_0 : i32, i32
  }
  func.func @transform_5(%arg0: i32) -> (i32, i32) {
    %c0_i32 = arith.constant 0 : i32
    %c0_i32_0 = arith.constant 0 : i32
    %c0_i32_1 = arith.constant 0 : i32
    return %c0_i32, %c0_i32_0 : i32, i32
  }
  func.func @transform_6(%arg0: i32) -> (i32, i32) {
    %c0_i32 = arith.constant 0 : i32
    %c0_i32_0 = arith.constant 0 : i32
    %c0_i32_1 = arith.constant 0 : i32
    return %c0_i32, %c0_i32_0 : i32, i32
  }
  func.func @transform_7(%arg0: i32) -> (i32, i32) {
    %c0_i32 = arith.constant 0 : i32
    %c0_i32_0 = arith.constant 0 : i32
    %c0_i32_1 = arith.constant 0 : i32
    return %c0_i32, %c0_i32_0 : i32, i32
  }
  func.func @transform_8(%arg0: i32) -> (i32, i32) {
    %c0_i32 = arith.constant 0 : i32
    %c0_i32_0 = arith.constant 0 : i32
    %c0_i32_1 = arith.constant 0 : i32
    return %c0_i32, %c0_i32_0 : i32, i32
  }
  func.func @transform_9(%arg0: i32) -> (i32, i32) {
    %c0_i32 = arith.constant 0 : i32
    %c0_i32_0 = arith.constant 0 : i32
    return %arg0, %c0_i32 : i32, i32
  }
}

</mosaic_0001>

<bundles_post_ra>
// kernel: tpu_custom_call.1
= control target key start
LH: loop header
LB: loop body
LE: loop exit
PB: predicated region body
PF: predicated region fallthrough
CT: control target
= control target key end

     0   :  { %s2384_s0 = inlined_call_operand.vmem [shape: f32[500,32], index: 0, kind: input, shape index: {}]   ;;  %s2385_s1 = inlined_call_operand.vmem [shape: bf16[32,64], index: 1, kind: input, shape index: {}]   ;;  %s2386_s2 = inlined_call_operand.vmem [shape: f32[1,64], index: 2, kind: input, shape index: {}]   ;;  %s2387_s3 = inlined_call_operand.vmem [shape: bf16[64,64], index: 3, kind: input, shape index: {}]   ;;  %s2388_s4 = inlined_call_operand.vmem [shape: f32[1,64], index: 4, kind: input, shape index: {}]   ;;  %s2389_s5 = inlined_call_operand.vmem [shape: bf16[64,32], index: 5, kind: input, shape index: {}]   ;;  %s2390_s6 = inlined_call_operand.vmem [shape: f32[1,32], index: 6, kind: input, shape index: {}]   ;;  %s2391_s7 = inlined_call_operand.vmem [shape: bf16[32,128], index: 7, kind: input, shape index: {}]   ;;  %s2392_s8 = inlined_call_operand.vmem [shape: f32[1,128], index: 8, kind: input, shape index: {}]   ;;  %s2393_s9 = inlined_call_operand.hbm [shape: bf16[500,128], index: 9, kind: output, shape index: {}]  }
   0x1   :  { %2395 = sst [smem:[#allocation5_spill]] %s2384_s0 }
   0x2   :  { %2396 = sst [smem:[#allocation6_spill]] %s2385_s1 }
   0x3   :  { %14 = vsyncpa [#allocation3], 0 }
   0x4   :  { %16 = vsyncpa [#allocation3 + $0x1], 0  ;;  %s1962_s30 = smov 0   ;;  %s1964_s10 = smov 0  }
   0x5   :  { %s1966_s11 = smov 0   ;;  %s1968_s12 = smov 0  }
   0x6 LB: > { %s1983_s13 = sadd.s32 4294967295, %s1907_s12   ;;  %s1490_s14 = sadd.s32 4294967294, %s1907_s12   ;;  %s1907_s12 = sphi %s1968_s12, %s2406_s12   ;;  %s1903_s11 = sphi %s1966_s11, %s2405_s11   ;;  %s1899_s10 = sphi %s1964_s10, %s2404_s10   ;;  %s1895_s30 = sphi %s1962_s30, %s2403_s30  }
   0x7   : > { %s1987_s15 = sadd.s32 1, %s1907_s12   ;;  %s223_s16 = sadd.s32 1, %s1903_s11 }
   0x8   : > { %s220_s17 = ssub.s32 %s1907_s12, %s1987_s15  ;;  %p233_p0 = scmp.ne.s32.totalorder %s1903_s11, %s1899_s10 }
   0x9   : > { %p221_p1 = scmp.eq.s32.totalorder %s220_s17, 0  ;;  %p234_p2 = scmp.eq.s32.totalorder %s1983_s13, 1 }
   0xa   : > { %p239_p3 = scmp.ne.s32.totalorder %s1899_s10, %s1895_s30  ;;  %p240_p4 = scmp.eq.s32.totalorder %s1490_s14, 1 }
   0xb   : > { %s1998_s18 = scalar_select %p221_p1, %s1903_s11, %s223_s16  }
   0xc   : > { %p2000_p5 = por %p234_p2, %p233_p0  ;;  %p2004_p6 = por %p240_p4, %p239_p3 }
   0xd   : > { %p1493_p7 = scmp.ge.s32.totalorder %s1907_s12, 1  ;;  %p299_p8 = scmp.lt.s32.totalorder %s1907_s12, 3 }
   0xf   : > { %p300_p9 = pnand %p1493_p7, %p299_p8 }
  0x10   : > { %s2399_s1 = sld [smem:[#allocation6_spill]] (!%p300_p9)  ;;  %s2014_s23 = sshll.u32 (!%p300_p9), %s1983_s13, 5 }
  0x11   : > { %303 = sbr.rel (%p300_p9) target bundleno = 886 (0x376), region = 56  ;;  %p344_p10 = scmp.lt.s32.totalorder (!%p300_p9), %s2014_s23, 62 }
  0x12   : > { %s2400_s0 = sld [smem:[#allocation5_spill]] (!%p300_p9)  ;;  %s336_s25 = sand.u32 (!%p300_p9), 1, %s1899_s10  }
  0x13   : > { %s2323_s29 = scalar_lea.sflag (!%p300_p9), [#allocation3], %s336_s25 }
  0x16   : > { %v1619_v0 = vld [vmem:[%s2399_s1 + $0x8] sm:$0xff]  ;;  %v1618_v1 = vld [vmem:[%s2399_s1] sm:$0xff]  ;;  %s345_s26 = scalar_select %p344_p10, %s2014_s23, 62  ;;  %vm427_vm0 = vcmask 261120   ;;  %v1623_v22 = vld [vmem:[%s2387_s3 + $0x18] sm:$0xff]  ;;  %vm649_vm1 = vcmask 523264  }
  0x17   : > { %482 = vmatpush.bf16.msra.mxu0 %v1619_v0  ;;  %702 = vmatpush.bf16.msra.mxu1 %v1623_v22  ;;  %v1622_v24 = vld [vmem:[%s2387_s3 + $0x10] sm:$0xff]  ;;  %v1621_v25 = vld [vmem:[%s2387_s3 + $0x8] sm:$0xff]  ;;  %v1620_v26 = vld [vmem:[%s2387_s3] sm:$0xff]  ;;  %s1414_s16 = ssub.s32 (%p2000_p5), 63, %s2014_s23 }
  0x18   : > { %s1496_s27 = sshll.u32 %s345_s26, 3  ;;  %v2067_v34 = vld [vmem:[%s2386_s2] ss:$0 sm:$0xff]  ;;  %p1415_p11 = scmp.lt.s32.totalorder (%p2000_p5), %s1414_s16, 32 }
  0x19   : > { %s2024_s14 = scalar_lea.vmem %s2400_s0, %s1496_s27  ;;  %s1494_s27 = sshll.u32 %s336_s25, 7 }
  0x1a   : > { %v359_v2 = vld [vmem:[%s2024_s14] sm:$0xff]  ;;  %v360_v3 = vld [vmem:[%s2024_s14 + $0x8] sm:$0xff]  ;;  %v361_v5 = vld [vmem:[%s2024_s14 + $0x10] sm:$0xff]  ;;  %s2259_s28 = scalar_lea.vmem [#allocation2], %s1494_s27 }
  0x1b   : > { %483 = vmatpush.bf16.msra.mxu0 %v1618_v1  ;;  %v391_v4 = vpack.c.bf16 %v360_v3, %v359_v2  ;;  %v362_v6 = vld [vmem:[%s2024_s14 + $0x18] sm:$0xff]  ;;  %v363_v8 = vld [vmem:[%s2024_s14 + $0x20] sm:$0xff]  ;;  %v364_v9 = vld [vmem:[%s2024_s14 + $0x28] sm:$0xff]  ;;  %703 = vmatpush.bf16.msra.mxu1 %v1622_v24 }
  0x1c   : > { %v392_v7 = vpack.c.bf16 %v362_v6, %v361_v5  ;;  %v393_v10 = vpack.c.bf16 %v364_v9, %v363_v8  ;;  %v365_v11 = vld [vmem:[%s2024_s14 + $0x30] sm:$0xff]  ;;  %v366_v12 = vld [vmem:[%s2024_s14 + $0x38] sm:$0xff]  ;;  %v367_v14 = vld [vmem:[%s2024_s14 + $0x40] sm:$0xff] }
  0x1d   : > { %v394_v13 = vpack.c.bf16 %v366_v12, %v365_v11  ;;  %v368_v15 = vld [vmem:[%s2024_s14 + $0x48] sm:$0xff]  ;;  %v369_v17 = vld [vmem:[%s2024_s14 + $0x50] sm:$0xff]  ;;  %v370_v18 = vld [vmem:[%s2024_s14 + $0x58] sm:$0xff] }
  0x1e   : > { %1505 = vmatmul.msk.bf16.vlgmr.msra.gmra.mxu0 %vm427_vm0, %v391_v4  ;;  %v395_v16 = vpack.c.bf16 %v368_v15, %v367_v14  ;;  %v396_v19 = vpack.c.bf16 %v370_v18, %v369_v17  ;;  %v371_v20 = vld [vmem:[%s2024_s14 + $0x60] sm:$0xff]  ;;  %v372_v21 = vld [vmem:[%s2024_s14 + $0x68] sm:$0xff]  ;;  %v373_v27 = vld [vmem:[%s2024_s14 + $0x70] sm:$0xff] }
  0x1f   : > { %v397_v23 = vpack.c.bf16 %v372_v21, %v371_v20  ;;  %704 = vmatpush.bf16.msra.mxu1 %v1621_v25  ;;  %v374_v28 = vld [vmem:[%s2024_s14 + $0x78] sm:$0xff]  ;;  %v375_v30 = vld [vmem:[%s2024_s14 + $0x80] sm:$0xff]  ;;  %v376_v31 = vld [vmem:[%s2024_s14 + $0x88] sm:$0xff] }
  0x20   : > { %v398_v29 = vpack.c.bf16 %v374_v28, %v373_v27  ;;  %v399_v32 = vpack.c.bf16 %v376_v31, %v375_v30  ;;  %v377_v40 = vld [vmem:[%s2024_s14 + $0x90] sm:$0xff]  ;;  %v378_v41 = vld [vmem:[%s2024_s14 + $0x98] sm:$0xff]  ;;  %v379_v50 = vld [vmem:[%s2024_s14 + $0xa0] sm:$0xff] }
  0x21   : > { %v400_v43 = vpack.c.bf16 %v378_v41, %v377_v40  ;;  %v380_v51 = vld [vmem:[%s2024_s14 + $0xa8] sm:$0xff]  ;;  %v381_v60 = vld [vmem:[%s2024_s14 + $0xb0] sm:$0xff]  ;;  %v382_v61 = vld [vmem:[%s2024_s14 + $0xb8] sm:$0xff] }
  0x22   : > { %v401_v53 = vpack.c.bf16 %v380_v51, %v379_v50  ;;  %v402_v63 = vpack.c.bf16 %v382_v61, %v381_v60  ;;  %v383_v6 = vld [vmem:[%s2024_s14 + $0xc0] sm:$0xff]  ;;  %v386_v17 = vld [vmem:[%s2024_s14 + $0xd8] sm:$0xff]  ;;  %v388_v27 = vld [vmem:[%s2024_s14 + $0xe8] sm:$0xff] }
  0x23   : > { %705 = vmatpush.bf16.msra.mxu1 %v1620_v26  ;;  %v387_v26 = vld [vmem:[%s2024_s14 + $0xe0] sm:$0xff]  ;;  %v1626_v41 = vld [vmem:[%s2389_s5 + $0x10] sm:$0xff] }
  0x24   : > { %v2132_v60 = vld [vmem:[%s2388_s4] ss:$0 sm:$0xff] }
  0x2e   : > { %1506 = vmatmul.msk.bf16.gmra.mxu0 %vm427_vm0, %v392_v7  ;;  %v384_v7 = vld [vmem:[%s2024_s14 + $0xc8] sm:$0xff] }
  0x2f   : > { %v403_v9 = vpack.c.bf16 %v384_v7, %v383_v6 }
  0x3e   : > { %1507 = vmatmul.msk.bf16.gmra.mxu0 %vm427_vm0, %v393_v10 }
  0x4e   : > { %1508 = vmatmul.msk.bf16.gmra.mxu0 %vm427_vm0, %v394_v13 }
  0x5e   : > { %1509 = vmatmul.msk.bf16.gmra.mxu0 %vm427_vm0, %v395_v16  ;;  %v385_v16 = vld [vmem:[%s2024_s14 + $0xd0] sm:$0xff] }
  0x6e   : > { %1510 = vmatmul.msk.bf16.gmra.mxu0 %vm427_vm0, %v396_v19  ;;  %v404_v19 = vpack.c.bf16 %v386_v17, %v385_v16 }
  0x7e   : > { %1511 = vmatmul.msk.bf16.gmra.mxu0 %vm427_vm0, %v397_v23 }
  0x8e   : > { %1512 = vmatmul.msk.bf16.gmra.mxu0 %vm427_vm0, %v398_v29  ;;  %v405_v29 = vpack.c.bf16 %v388_v27, %v387_v26 }
  0x9b   : > { %v485_v33 = vpop.f32.mrf.mxu0 }
  0x9c   : > { %v486_v35 = vadd.f32 %v2067_v34, %v485_v33 }
  0x9e   : > { %1513 = vmatmul.msk.bf16.gmra.mxu0 %vm427_vm0, %v399_v32  ;;  %v565_v38 = vmax.f32 %v486_v35, 0.0  ;;  %v1627_v35 = vld [vmem:[%s2389_s5 + $0x18] sm:$0xff] }
  0x9f   : > { %923 = vmatpush.bf16.msra.mxu2 %v1627_v35 }
  0xa3   : > { %v487_v36 = vpop.f32.mrf.mxu0  ;;  %924 = vmatpush.bf16.msra.mxu2 %v1626_v41 }
  0xa4   : > { %v488_v37 = vadd.f32 %v2067_v34, %v487_v36 }
  0xa6   : > { %v566_v39 = vmax.f32 %v488_v37, 0.0 }
  0xa8   : > { %v597_v42 = vpack.c.bf16 %v566_v39, %v565_v38  ;;  %v389_v38 = vld [vmem:[%s2024_s14 + $0xf0] sm:$0xff]  ;;  %v390_v39 = vld [vmem:[%s2024_s14 + $0xf8] sm:$0xff] }
  0xaa   : > { %1537 = vmatmul.msk.bf16.vlgmr.msra.gmra.mxu1 %vm649_vm1, %v597_v42  ;;  %v406_v42 = vpack.c.bf16 %v390_v39, %v389_v38 }
  0xab   : > { %v490_v44 = vpop.f32.mrf.mxu0 }
  0xac   : > { %v491_v45 = vadd.f32 %v2067_v34, %v490_v44  ;;  %v1625_v44 = vld [vmem:[%s2389_s5 + $0x8] sm:$0xff] }
  0xad   : > { %925 = vmatpush.bf16.msra.mxu2 %v1625_v44 }
  0xae   : > { %1514 = vmatmul.msk.bf16.gmra.mxu0 %vm427_vm0, %v400_v43  ;;  %v567_v48 = vmax.f32 %v491_v45, 0.0  ;;  %v1624_v45 = vld [vmem:[%s2389_s5] sm:$0xff] }
  0xb1   : > { %926 = vmatpush.bf16.msra.mxu2 %v1624_v45 }
  0xb3   : > { %v492_v46 = vpop.f32.mrf.mxu0 }
  0xb4   : > { %v493_v47 = vadd.f32 %v2067_v34, %v492_v46 }
  0xb6   : > { %v568_v49 = vmax.f32 %v493_v47, 0.0 }
  0xb8   : > { %v598_v52 = vpack.c.bf16 %v568_v49, %v567_v48 }
  0xba   : > { %1538 = vmatmul.msk.bf16.gmra.mxu1 %vm649_vm1, %v598_v52 }
  0xbb   : > { %v495_v54 = vpop.f32.mrf.mxu0 }
  0xbc   : > { %v496_v55 = vadd.f32 %v2067_v34, %v495_v54 }
  0xbe   : > { %1515 = vmatmul.msk.bf16.gmra.mxu0 %vm427_vm0, %v401_v53  ;;  %v569_v58 = vmax.f32 %v496_v55, 0.0 }
  0xc3   : > { %v497_v56 = vpop.f32.mrf.mxu0 }
  0xc4   : > { %v498_v57 = vadd.f32 %v2067_v34, %v497_v56 }
  0xc6   : > { %v570_v59 = vmax.f32 %v498_v57, 0.0 }
  0xc8   : > { %v599_v62 = vpack.c.bf16 %v570_v59, %v569_v58 }
  0xca   : > { %1539 = vmatmul.msk.bf16.gmra.mxu1 %vm649_vm1, %v599_v62 }
  0xcb   : > { %v500_v0 = vpop.f32.mrf.mxu0 }
  0xcc   : > { %v501_v1 = vadd.f32 %v2067_v34, %v500_v0 }
  0xce   : > { %1516 = vmatmul.msk.bf16.gmra.mxu0 %vm427_vm0, %v402_v63  ;;  %v571_v4 = vmax.f32 %v501_v1, 0.0 }
  0xd3   : > { %v502_v2 = vpop.f32.mrf.mxu0 }
  0xd4   : > { %v503_v3 = vadd.f32 %v2067_v34, %v502_v2 }
  0xd6   : > { %v572_v5 = vmax.f32 %v503_v3, 0.0 }
  0xd8   : > { %v600_v8 = vpack.c.bf16 %v572_v5, %v571_v4 }
  0xda   : > { %1540 = vmatmul.msk.bf16.gmra.mxu1 %vm649_vm1, %v600_v8 }
  0xdb   : > { %v505_v10 = vpop.f32.mrf.mxu0 }
  0xdc   : > { %v506_v11 = vadd.f32 %v2067_v34, %v505_v10 }
  0xde   : > { %1517 = vmatmul.msk.bf16.gmra.mxu0 %vm427_vm0, %v403_v9  ;;  %v573_v14 = vmax.f32 %v506_v11, 0.0 }
  0xe3   : > { %v507_v12 = vpop.f32.mrf.mxu0 }
  0xe4   : > { %v508_v13 = vadd.f32 %v2067_v34, %v507_v12 }
  0xe6   : > { %v574_v15 = vmax.f32 %v508_v13, 0.0 }
  0xe8   : > { %v601_v18 = vpack.c.bf16 %v574_v15, %v573_v14 }
  0xea   : > { %1541 = vmatmul.msk.bf16.gmra.mxu1 %vm649_vm1, %v601_v18 }
  0xeb   : > { %v510_v20 = vpop.f32.mrf.mxu0 }
  0xec   : > { %v511_v21 = vadd.f32 %v2067_v34, %v510_v20 }
  0xee   : > { %1518 = vmatmul.msk.bf16.gmra.mxu0 %vm427_vm0, %v404_v19  ;;  %v575_v24 = vmax.f32 %v511_v21, 0.0 }
  0xf3   : > { %v512_v22 = vpop.f32.mrf.mxu0 }
  0xf4   : > { %v513_v23 = vadd.f32 %v2067_v34, %v512_v22 }
  0xf6   : > { %v576_v25 = vmax.f32 %v513_v23, 0.0 }
  0xf8   : > { %v602_v28 = vpack.c.bf16 %v576_v25, %v575_v24 }
  0xfa   : > { %1542 = vmatmul.msk.bf16.gmra.mxu1 %vm649_vm1, %v602_v28 }
  0xfb   : > { %v515_v30 = vpop.f32.mrf.mxu0 }
  0xfc   : > { %v516_v31 = vadd.f32 %v2067_v34, %v515_v30 }
  0xfe   : > { %1519 = vmatmul.msk.bf16.gmra.mxu0 %vm427_vm0, %v405_v29  ;;  %v577_v36 = vmax.f32 %v516_v31, 0.0 }
 0x103   : > { %v517_v32 = vpop.f32.mrf.mxu0 }
 0x104   : > { %v518_v33 = vadd.f32 %v2067_v34, %v517_v32 }
 0x106   : > { %v578_v37 = vmax.f32 %v518_v33, 0.0 }
 0x108   : > { %v603_v40 = vpack.c.bf16 %v578_v37, %v577_v36 }
 0x10a   : > { %1543 = vmatmul.msk.bf16.gmra.mxu1 %vm649_vm1, %v603_v40 }
 0x10b   : > { %v520_v43 = vpop.f32.mrf.mxu0 }
 0x10c   : > { %v521_v46 = vadd.f32 %v2067_v34, %v520_v43 }
 0x10e   : > { %1520 = vmatmul.msk.bf16.gmra.mxu0 %vm427_vm0, %v406_v42  ;;  %v579_v49 = vmax.f32 %v521_v46, 0.0 }
 0x113   : > { %v522_v47 = vpop.f32.mrf.mxu0 }
 0x114   : > { %v523_v48 = vadd.f32 %v2067_v34, %v522_v47 }
 0x116   : > { %v580_v50 = vmax.f32 %v523_v48, 0.0 }
 0x118   : > { %v604_v51 = vpack.c.bf16 %v580_v50, %v579_v49 }
 0x11a   : > { %1544 = vmatmul.msk.bf16.gmra.mxu1 %vm649_vm1, %v604_v51 }
 0x11b   : > { %v525_v52 = vpop.f32.mrf.mxu0 }
 0x11c   : > { %v526_v53 = vadd.f32 %v2067_v34, %v525_v52 }
 0x11e   : > { %v581_v56 = vmax.f32 %v526_v53, 0.0 }
 0x123   : > { %v527_v54 = vpop.f32.mrf.mxu0 }
 0x124   : > { %v528_v55 = vadd.f32 %v2067_v34, %v527_v54 }
 0x126   : > { %v582_v57 = vmax.f32 %v528_v55, 0.0 }
 0x127   : > { %v707_v58 = vpop.f32.mrf.mxu1 }
 0x128   : > { %v605_v59 = vpack.c.bf16 %v582_v57, %v581_v56  ;;  %v708_v62 = vadd.f32 %v2132_v60, %v707_v58 }
 0x12a   : > { %1545 = vmatmul.msk.bf16.gmra.mxu1 %vm649_vm1, %v605_v59  ;;  %v787_v1 = vmax.f32 %v708_v62, 0.0 }
 0x12b   : > { %v530_v61 = vpop.f32.mrf.mxu0 }
 0x12c   : > { %v531_v2 = vadd.f32 %v2067_v34, %v530_v61 }
 0x12e   : > { %v583_v7 = vmax.f32 %v531_v2, 0.0 }
 0x12f   : > { %v709_v63 = vpop.f32.mrf.mxu1 }
 0x130   : > { %v710_v0 = vadd.f32 %v2132_v60, %v709_v63 }
 0x132   : > { %v788_v3 = vmax.f32 %v710_v0, 0.0 }
 0x133   : > { %v532_v4 = vpop.f32.mrf.mxu0 }
 0x134   : > { %v533_v5 = vadd.f32 %v2067_v34, %v532_v4  ;;  %v819_v6 = vpack.c.bf16 %v788_v3, %v787_v1 }
 0x136   : > { %v584_v8 = vmax.f32 %v533_v5, 0.0  ;;  %1569 = vmatmul.msk.bf16.vlgmr.msra.gmra.mxu2 %vm649_vm1, %v819_v6 }
 0x137   : > { %v712_v9 = vpop.f32.mrf.mxu1 }
 0x138   : > { %v606_v10 = vpack.c.bf16 %v584_v8, %v583_v7  ;;  %v713_v12 = vadd.f32 %v2132_v60, %v712_v9 }
 0x13a   : > { %1546 = vmatmul.msk.bf16.gmra.mxu1 %vm649_vm1, %v606_v10  ;;  %v789_v15 = vmax.f32 %v713_v12, 0.0 }
 0x13b   : > { %v535_v11 = vpop.f32.mrf.mxu0 }
 0x13c   : > { %v536_v16 = vadd.f32 %v2067_v34, %v535_v11 }
 0x13e   : > { %v585_v21 = vmax.f32 %v536_v16, 0.0 }
 0x13f   : > { %v714_v13 = vpop.f32.mrf.mxu1 }
 0x140   : > { %v715_v14 = vadd.f32 %v2132_v60, %v714_v13 }
 0x142   : > { %v790_v17 = vmax.f32 %v715_v14, 0.0 }
 0x143   : > { %v537_v18 = vpop.f32.mrf.mxu0 }
 0x144   : > { %v538_v19 = vadd.f32 %v2067_v34, %v537_v18  ;;  %v820_v20 = vpack.c.bf16 %v790_v17, %v789_v15 }
 0x146   : > { %v586_v22 = vmax.f32 %v538_v19, 0.0  ;;  %1570 = vmatmul.msk.bf16.gmra.mxu2 %vm649_vm1, %v820_v20 }
 0x147   : > { %v717_v23 = vpop.f32.mrf.mxu1 }
 0x148   : > { %v607_v24 = vpack.c.bf16 %v586_v22, %v585_v21  ;;  %v718_v26 = vadd.f32 %v2132_v60, %v717_v23 }
 0x14a   : > { %1547 = vmatmul.msk.bf16.gmra.mxu1 %vm649_vm1, %v607_v24  ;;  %v791_v29 = vmax.f32 %v718_v26, 0.0 }
 0x14b   : > { %v540_v25 = vpop.f32.mrf.mxu0 }
 0x14c   : > { %v541_v30 = vadd.f32 %v2067_v34, %v540_v25 }
 0x14e   : > { %v587_v36 = vmax.f32 %v541_v30, 0.0 }
 0x14f   : > { %v719_v27 = vpop.f32.mrf.mxu1 }
 0x150   : > { %v720_v28 = vadd.f32 %v2132_v60, %v719_v27 }
 0x152   : > { %v792_v31 = vmax.f32 %v720_v28, 0.0 }
 0x153   : > { %v542_v32 = vpop.f32.mrf.mxu0 }
 0x154   : > { %v543_v33 = vadd.f32 %v2067_v34, %v542_v32  ;;  %v821_v35 = vpack.c.bf16 %v792_v31, %v791_v29 }
 0x156   : > { %v588_v37 = vmax.f32 %v543_v33, 0.0  ;;  %1571 = vmatmul.msk.bf16.gmra.mxu2 %vm649_vm1, %v821_v35 }
 0x157   : > { %v722_v38 = vpop.f32.mrf.mxu1 }
 0x158   : > { %v608_v39 = vpack.c.bf16 %v588_v37, %v587_v36  ;;  %v723_v41 = vadd.f32 %v2132_v60, %v722_v38  ;;  %v1629_v36 = vld [vmem:[%s2391_s7 + $0x8] sm:$0xff] }
 0x159   : > { %1130 = vmatpush.bf16.msra.mxu3 %v1629_v36 }
 0x15a   : > { %1548 = vmatmul.msk.bf16.gmra.mxu1 %vm649_vm1, %v608_v39  ;;  %v793_v44 = vmax.f32 %v723_v41, 0.0  ;;  %v1628_v39 = vld [vmem:[%s2391_s7] sm:$0xff] }
 0x15b   : > { %v545_v40 = vpop.f32.mrf.mxu0 }
 0x15c   : > { %v546_v45 = vadd.f32 %v2067_v34, %v545_v40 }
 0x15d   : > { %1131 = vmatpush.bf16.msra.mxu3 %v1628_v39 }
 0x15e   : > { %v589_v50 = vmax.f32 %v546_v45, 0.0 }
 0x15f   : > { %v724_v42 = vpop.f32.mrf.mxu1 }
 0x160   : > { %v725_v43 = vadd.f32 %v2132_v60, %v724_v42 }
 0x162   : > { %v794_v46 = vmax.f32 %v725_v43, 0.0 }
 0x163   : > { %v547_v47 = vpop.f32.mrf.mxu0 }
 0x164   : > { %v548_v48 = vadd.f32 %v2067_v34, %v547_v47  ;;  %v822_v49 = vpack.c.bf16 %v794_v46, %v793_v44 }
 0x166   : > { %v590_v51 = vmax.f32 %v548_v48, 0.0  ;;  %1572 = vmatmul.msk.bf16.gmra.mxu2 %vm649_vm1, %v822_v49 }
 0x167   : > { %v727_v52 = vpop.f32.mrf.mxu1 }
 0x168   : > { %v609_v53 = vpack.c.bf16 %v590_v51, %v589_v50  ;;  %v728_v55 = vadd.f32 %v2132_v60, %v727_v52  ;;  %v2192_v50 = vld [vmem:[%s2390_s6] ss:$0 sm:$0xff] }
 0x16a   : > { %1549 = vmatmul.msk.bf16.gmra.mxu1 %vm649_vm1, %v609_v53  ;;  %v795_v58 = vmax.f32 %v728_v55, 0.0 }
 0x16b   : > { %v550_v54 = vpop.f32.mrf.mxu0 }
 0x16c   : > { %v551_v59 = vadd.f32 %v2067_v34, %v550_v54 }
 0x16e   : > { %v591_v1 = vmax.f32 %v551_v59, 0.0 }
 0x16f   : > { %v729_v56 = vpop.f32.mrf.mxu1 }
 0x170   : > { %v730_v57 = vadd.f32 %v2132_v60, %v729_v56 }
 0x172   : > { %v796_v61 = vmax.f32 %v730_v57, 0.0 }
 0x173   : > { %v552_v62 = vpop.f32.mrf.mxu0 }
 0x174   : > { %v823_v63 = vpack.c.bf16 %v796_v61, %v795_v58  ;;  %v553_v0 = vadd.f32 %v2067_v34, %v552_v62 }
 0x176   : > { %v592_v2 = vmax.f32 %v553_v0, 0.0  ;;  %1573 = vmatmul.msk.bf16.gmra.mxu2 %vm649_vm1, %v823_v63 }
 0x177   : > { %v732_v3 = vpop.f32.mrf.mxu1 }
 0x178   : > { %v610_v4 = vpack.c.bf16 %v592_v2, %v591_v1  ;;  %v733_v6 = vadd.f32 %v2132_v60, %v732_v3 }
 0x17a   : > { %1550 = vmatmul.msk.bf16.gmra.mxu1 %vm649_vm1, %v610_v4  ;;  %v797_v9 = vmax.f32 %v733_v6, 0.0 }
 0x17b   : > { %v555_v5 = vpop.f32.mrf.mxu0 }
 0x17c   : > { %v556_v10 = vadd.f32 %v2067_v34, %v555_v5 }
 0x17e   : > { %v593_v15 = vmax.f32 %v556_v10, 0.0 }
 0x17f   : > { %v734_v7 = vpop.f32.mrf.mxu1 }
 0x180   : > { %v735_v8 = vadd.f32 %v2132_v60, %v734_v7 }
 0x182   : > { %v798_v11 = vmax.f32 %v735_v8, 0.0 }
 0x183   : > { %v557_v12 = vpop.f32.mrf.mxu0 }
 0x184   : > { %v824_v13 = vpack.c.bf16 %v798_v11, %v797_v9  ;;  %v558_v14 = vadd.f32 %v2067_v34, %v557_v12 }
 0x186   : > { %v594_v16 = vmax.f32 %v558_v14, 0.0  ;;  %1574 = vmatmul.msk.bf16.gmra.mxu2 %vm649_vm1, %v824_v13 }
 0x187   : > { %v737_v17 = vpop.f32.mrf.mxu1 }
 0x188   : > { %v611_v18 = vpack.c.bf16 %v594_v16, %v593_v15  ;;  %v738_v20 = vadd.f32 %v2132_v60, %v737_v17 }
 0x18a   : > { %1551 = vmatmul.msk.bf16.gmra.mxu1 %vm649_vm1, %v611_v18  ;;  %v799_v23 = vmax.f32 %v738_v20, 0.0 }
 0x18b   : > { %v560_v19 = vpop.f32.mrf.mxu0 }
 0x18c   : > { %v561_v24 = vadd.f32 %v2067_v34, %v560_v19 }
 0x18e   : > { %v595_v29 = vmax.f32 %v561_v24, 0.0 }
 0x18f   : > { %v739_v21 = vpop.f32.mrf.mxu1 }
 0x190   : > { %v740_v22 = vadd.f32 %v2132_v60, %v739_v21 }
 0x192   : > { %v800_v25 = vmax.f32 %v740_v22, 0.0 }
 0x193   : > { %v562_v26 = vpop.f32.mrf.mxu0 }
 0x194   : > { %v825_v27 = vpack.c.bf16 %v800_v25, %v799_v23  ;;  %v563_v28 = vadd.f32 %v2067_v34, %v562_v26 }
 0x196   : > { %v596_v30 = vmax.f32 %v563_v28, 0.0  ;;  %1575 = vmatmul.msk.bf16.gmra.mxu2 %vm649_vm1, %v825_v27 }
 0x197   : > { %v742_v31 = vpop.f32.mrf.mxu1 }
 0x198   : > { %v612_v32 = vpack.c.bf16 %v596_v30, %v595_v29  ;;  %v743_v33 = vadd.f32 %v2132_v60, %v742_v31 }
 0x19a   : > { %1552 = vmatmul.msk.bf16.gmra.mxu1 %vm649_vm1, %v612_v32  ;;  %v801_v38 = vmax.f32 %v743_v33, 0.0 }
 0x19f   : > { %v744_v35 = vpop.f32.mrf.mxu1 }
 0x1a0   : > { %v745_v37 = vadd.f32 %v2132_v60, %v744_v35 }
 0x1a2   : > { %v802_v34 = vmax.f32 %v745_v37, 0.0 }
 0x1a4   : > { %v826_v40 = vpack.c.bf16 %v802_v34, %v801_v38 }
 0x1a6   : > { %1576 = vmatmul.msk.bf16.gmra.mxu2 %vm649_vm1, %v826_v40 }
 0x1a7   : > { %v747_v41 = vpop.f32.mrf.mxu1 }
 0x1a8   : > { %v748_v42 = vadd.f32 %v2132_v60, %v747_v41 }
 0x1aa   : > { %v803_v45 = vmax.f32 %v748_v42, 0.0 }
 0x1af   : > { %v749_v43 = vpop.f32.mrf.mxu1 }
 0x1b0   : > { %v750_v44 = vadd.f32 %v2132_v60, %v749_v43 }
 0x1b2   : > { %v804_v46 = vmax.f32 %v750_v44, 0.0 }
 0x1b4   : > { %v827_v47 = vpack.c.bf16 %v804_v46, %v803_v45 }
 0x1b6   : > { %1577 = vmatmul.msk.bf16.gmra.mxu2 %vm649_vm1, %v827_v47 }
 0x1b7   : > { %v752_v48 = vpop.f32.mrf.mxu1 }
 0x1b8   : > { %v753_v51 = vadd.f32 %v2132_v60, %v752_v48 }
 0x1b9   : > { %v928_v49 = vpop.f32.mrf.mxu2 }
 0x1ba   : > { %v929_v53 = vadd.f32 %v2192_v50, %v928_v49  ;;  %v805_v56 = vmax.f32 %v753_v51, 0.0 }
 0x1bc   : > { %v1008_v59 = vmax.f32 %v929_v53, 0.0 }
 0x1bf   : > { %v754_v52 = vpop.f32.mrf.mxu1 }
 0x1c0   : > { %v755_v54 = vadd.f32 %v2132_v60, %v754_v52 }
 0x1c1   : > { %v930_v55 = vpop.f32.mrf.mxu2 }
 0x1c2   : > { %v806_v57 = vmax.f32 %v755_v54, 0.0  ;;  %v931_v58 = vadd.f32 %v2192_v50, %v930_v55 }
 0x1c4   : > { %v828_v61 = vpack.c.bf16 %v806_v57, %v805_v56  ;;  %v1009_v62 = vmax.f32 %v931_v58, 0.0 }
 0x1c6   : > { %1578 = vmatmul.msk.bf16.gmra.mxu2 %vm649_vm1, %v828_v61  ;;  %v1040_v63 = vpack.c.bf16 %v1009_v62, %v1008_v59 }
 0x1c7   : > { %v757_v0 = vpop.f32.mrf.mxu1 }
 0x1c8   : > { %1593 = vmatmul.msk.bf16.vlgmr.msra.gmra.mxu3 %vm427_vm0, %v1040_v63  ;;  %v758_v2 = vadd.f32 %v2132_v60, %v757_v0 }
 0x1c9   : > { %v933_v1 = vpop.f32.mrf.mxu2 }
 0x1ca   : > { %v934_v4 = vadd.f32 %v2192_v50, %v933_v1  ;;  %v807_v7 = vmax.f32 %v758_v2, 0.0 }
 0x1cc   : > { %v1010_v10 = vmax.f32 %v934_v4, 0.0 }
 0x1cf   : > { %v759_v3 = vpop.f32.mrf.mxu1 }
 0x1d0   : > { %v760_v5 = vadd.f32 %v2132_v60, %v759_v3 }
 0x1d1   : > { %v935_v6 = vpop.f32.mrf.mxu2 }
 0x1d2   : > { %v808_v8 = vmax.f32 %v760_v5, 0.0  ;;  %v936_v9 = vadd.f32 %v2192_v50, %v935_v6 }
 0x1d4   : > { %v829_v11 = vpack.c.bf16 %v808_v8, %v807_v7  ;;  %v1011_v12 = vmax.f32 %v936_v9, 0.0 }
 0x1d6   : > { %1579 = vmatmul.msk.bf16.gmra.mxu2 %vm649_vm1, %v829_v11  ;;  %v1041_v13 = vpack.c.bf16 %v1011_v12, %v1010_v10 }
 0x1d7   : > { %v762_v14 = vpop.f32.mrf.mxu1 }
 0x1d8   : > { %1594 = vmatmul.msk.bf16.gmra.mxu3 %vm427_vm0, %v1041_v13  ;;  %v763_v16 = vadd.f32 %v2132_v60, %v762_v14 }
 0x1d9   : > { %v938_v15 = vpop.f32.mrf.mxu2 }
 0x1da   : > { %v939_v18 = vadd.f32 %v2192_v50, %v938_v15  ;;  %v809_v21 = vmax.f32 %v763_v16, 0.0 }
 0x1dc   : > { %v1012_v24 = vmax.f32 %v939_v18, 0.0 }
 0x1df   : > { %v764_v17 = vpop.f32.mrf.mxu1 }
 0x1e0   : > { %v765_v19 = vadd.f32 %v2132_v60, %v764_v17 }
 0x1e1   : > { %v940_v20 = vpop.f32.mrf.mxu2 }
 0x1e2   : > { %v810_v22 = vmax.f32 %v765_v19, 0.0  ;;  %v941_v23 = vadd.f32 %v2192_v50, %v940_v20 }
 0x1e4   : > { %v830_v25 = vpack.c.bf16 %v810_v22, %v809_v21  ;;  %v1013_v26 = vmax.f32 %v941_v23, 0.0 }
 0x1e6   : > { %1580 = vmatmul.msk.bf16.gmra.mxu2 %vm649_vm1, %v830_v25  ;;  %v1042_v27 = vpack.c.bf16 %v1013_v26, %v1012_v24 }
 0x1e7   : > { %v767_v28 = vpop.f32.mrf.mxu1 }
 0x1e8   : > { %1595 = vmatmul.msk.bf16.gmra.mxu3 %vm427_vm0, %v1042_v27  ;;  %v768_v30 = vadd.f32 %v2132_v60, %v767_v28 }
 0x1e9   : > { %v943_v29 = vpop.f32.mrf.mxu2 }
 0x1ea   : > { %v944_v32 = vadd.f32 %v2192_v50, %v943_v29  ;;  %v811_v36 = vmax.f32 %v768_v30, 0.0 }
 0x1ec   : > { %v1014_v34 = vmax.f32 %v944_v32, 0.0 }
 0x1ef   : > { %v769_v31 = vpop.f32.mrf.mxu1 }
 0x1f0   : > { %v770_v33 = vadd.f32 %v2132_v60, %v769_v31 }
 0x1f1   : > { %v945_v35 = vpop.f32.mrf.mxu2 }
 0x1f2   : > { %v812_v37 = vmax.f32 %v770_v33, 0.0  ;;  %v946_v38 = vadd.f32 %v2192_v50, %v945_v35 }
 0x1f4   : > { %v831_v39 = vpack.c.bf16 %v812_v37, %v811_v36  ;;  %v1015_v40 = vmax.f32 %v946_v38, 0.0  ;;  %v2246_v36 = vld [vmem:[%s2392_s8] ss:$0 sm:$0xff] }
 0x1f6   : > { %1581 = vmatmul.msk.bf16.gmra.mxu2 %vm649_vm1, %v831_v39  ;;  %v1043_v41 = vpack.c.bf16 %v1015_v40, %v1014_v34 }
 0x1f7   : > { %v772_v42 = vpop.f32.mrf.mxu1 }
 0x1f8   : > { %1596 = vmatmul.msk.bf16.gmra.mxu3 %vm427_vm0, %v1043_v41  ;;  %v773_v44 = vadd.f32 %v2132_v60, %v772_v42 }
 0x1f9   : > { %v948_v43 = vpop.f32.mrf.mxu2 }
 0x1fa   : > { %v949_v46 = vadd.f32 %v2192_v50, %v948_v43  ;;  %v813_v49 = vmax.f32 %v773_v44, 0.0 }
 0x1fc   : > { %v1016_v53 = vmax.f32 %v949_v46, 0.0 }
 0x1ff   : > { %v774_v45 = vpop.f32.mrf.mxu1 }
 0x200   : > { %v775_v47 = vadd.f32 %v2132_v60, %v774_v45 }
 0x201   : > { %v950_v48 = vpop.f32.mrf.mxu2 }
 0x202   : > { %v814_v51 = vmax.f32 %v775_v47, 0.0  ;;  %v951_v52 = vadd.f32 %v2192_v50, %v950_v48 }
 0x204   : > { %v832_v54 = vpack.c.bf16 %v814_v51, %v813_v49  ;;  %v1017_v55 = vmax.f32 %v951_v52, 0.0 }
 0x206   : > { %v1044_v56 = vpack.c.bf16 %v1017_v55, %v1016_v53  ;;  %1582 = vmatmul.msk.bf16.gmra.mxu2 %vm649_vm1, %v832_v54 }
 0x207   : > { %v777_v57 = vpop.f32.mrf.mxu1 }
 0x208   : > { %1597 = vmatmul.msk.bf16.gmra.mxu3 %vm427_vm0, %v1044_v56  ;;  %v778_v59 = vadd.f32 %v2132_v60, %v777_v57 }
 0x209   : > { %v953_v58 = vpop.f32.mrf.mxu2 }
 0x20a   : > { %v954_v62 = vadd.f32 %v2192_v50, %v953_v58  ;;  %v815_v1 = vmax.f32 %v778_v59, 0.0 }
 0x20c   : > { %v1018_v4 = vmax.f32 %v954_v62, 0.0 }
 0x20f   : > { %v779_v61 = vpop.f32.mrf.mxu1 }
 0x210   : > { %v780_v63 = vadd.f32 %v2132_v60, %v779_v61 }
 0x211   : > { %v955_v0 = vpop.f32.mrf.mxu2 }
 0x212   : > { %v816_v2 = vmax.f32 %v780_v63, 0.0  ;;  %v956_v3 = vadd.f32 %v2192_v50, %v955_v0 }
 0x214   : > { %v833_v5 = vpack.c.bf16 %v816_v2, %v815_v1  ;;  %v1019_v6 = vmax.f32 %v956_v3, 0.0 }
 0x216   : > { %v1045_v7 = vpack.c.bf16 %v1019_v6, %v1018_v4  ;;  %1583 = vmatmul.msk.bf16.gmra.mxu2 %vm649_vm1, %v833_v5 }
 0x217   : > { %v782_v8 = vpop.f32.mrf.mxu1 }
 0x218   : > { %1598 = vmatmul.msk.bf16.gmra.mxu3 %vm427_vm0, %v1045_v7  ;;  %v783_v10 = vadd.f32 %v2132_v60, %v782_v8 }
 0x219   : > { %v958_v9 = vpop.f32.mrf.mxu2 }
 0x21a   : > { %v959_v12 = vadd.f32 %v2192_v50, %v958_v9  ;;  %v817_v15 = vmax.f32 %v783_v10, 0.0 }
 0x21c   : > { %v1020_v18 = vmax.f32 %v959_v12, 0.0 }
 0x21f   : > { %v784_v11 = vpop.f32.mrf.mxu1 }
 0x220   : > { %v785_v13 = vadd.f32 %v2132_v60, %v784_v11 }
 0x221   : > { %v960_v14 = vpop.f32.mrf.mxu2 }
 0x222   : > { %v818_v16 = vmax.f32 %v785_v13, 0.0  ;;  %v961_v17 = vadd.f32 %v2192_v50, %v960_v14 }
 0x224   : > { %v834_v19 = vpack.c.bf16 %v818_v16, %v817_v15  ;;  %v1021_v20 = vmax.f32 %v961_v17, 0.0 }
 0x226   : > { %v1046_v21 = vpack.c.bf16 %v1021_v20, %v1020_v18  ;;  %1584 = vmatmul.msk.bf16.gmra.mxu2 %vm649_vm1, %v834_v19 }
 0x228   : > { %1599 = vmatmul.msk.bf16.gmra.mxu3 %vm427_vm0, %v1046_v21 }
 0x229   : > { %v963_v22 = vpop.f32.mrf.mxu2 }
 0x22a   : > { %v964_v23 = vadd.f32 %v2192_v50, %v963_v22 }
 0x22c   : > { %v1022_v60 = vmax.f32 %v964_v23, 0.0 }
 0x231   : > { %v965_v24 = vpop.f32.mrf.mxu2 }
 0x232   : > { %v966_v25 = vadd.f32 %v2192_v50, %v965_v24 }
 0x234   : > { %v1023_v26 = vmax.f32 %v966_v25, 0.0 }
 0x236   : > { %v1047_v27 = vpack.c.bf16 %v1023_v26, %v1022_v60 }
 0x238   : > { %1600 = vmatmul.msk.bf16.gmra.mxu3 %vm427_vm0, %v1047_v27 }
 0x239   : > { %v968_v28 = vpop.f32.mrf.mxu2 }
 0x23a   : > { %v969_v29 = vadd.f32 %v2192_v50, %v968_v28 }
 0x23c   : > { %v1024_v32 = vmax.f32 %v969_v29, 0.0 }
 0x241   : > { %v970_v30 = vpop.f32.mrf.mxu2 }
 0x242   : > { %v971_v31 = vadd.f32 %v2192_v50, %v970_v30 }
 0x244   : > { %v1025_v33 = vmax.f32 %v971_v31, 0.0 }
 0x246   : > { %v1048_v35 = vpack.c.bf16 %v1025_v33, %v1024_v32 }
 0x248   : > { %1601 = vmatmul.msk.bf16.gmra.mxu3 %vm427_vm0, %v1048_v35 }
 0x249   : > { %v973_v37 = vpop.f32.mrf.mxu2 }
 0x24a   : > { %v974_v39 = vadd.f32 %v2192_v50, %v973_v37 }
 0x24b   : > { %v1133_v38 = vpop.f32.mrf.mxu3 }
 0x24c   : > { %v1134_v34 = vadd.f32 %v2246_v36, %v1133_v38  ;;  %v1026_v44 = vmax.f32 %v974_v39, 0.0 }
 0x24e   : > { %v1213_v40 = vmul.f32 0.5, %v1134_v34 }
 0x250   : > { %1770 = vtanh.f32 %v1213_v40 }
 0x251   : > { %v975_v41 = vpop.f32.mrf.mxu2 }
 0x252   : > { %v976_v42 = vadd.f32 %v2192_v50, %v975_v41 }
 0x253   : > { %v1135_v43 = vpop.f32.mrf.mxu3 }
 0x254   : > { %v1027_v45 = vmax.f32 %v976_v42, 0.0  ;;  %v1136_v46 = vadd.f32 %v2246_v36, %v1135_v43 }
 0x256   : > { %v1049_v47 = vpack.c.bf16 %v1027_v45, %v1026_v44  ;;  %v1214_v48 = vmul.f32 0.5, %v1136_v46  ;;  %v1771_v51 = vpop.eup %1770 }
 0x257   : > { %v1277_v54 = vmul.f32 0.5, %v1771_v51 }
 0x258   : > { %1772 = vtanh.f32 %v1214_v48  ;;  %1602 = vmatmul.msk.bf16.gmra.mxu3 %vm427_vm0, %v1049_v47 }
 0x259   : > { %v978_v49 = vpop.f32.mrf.mxu2  ;;  %v1309_v59 = vadd.f32 0.5, %v1277_v54 }
 0x25a   : > { %v979_v57 = vadd.f32 %v2192_v50, %v978_v49 }
 0x25b   : > { %v1138_v52 = vpop.f32.mrf.mxu3 }
 0x25c   : > { %v1139_v53 = vadd.f32 %v2246_v36, %v1138_v52  ;;  %v1028_v2 = vmax.f32 %v979_v57, 0.0 }
 0x25e   : > { %v1773_v55 = vpop.eup %1772  ;;  %v1215_v58 = vmul.f32 0.5, %v1139_v53 }
 0x25f   : > { %v1278_v56 = vmul.f32 0.5, %v1773_v55 }
 0x260   : > { %1774 = vtanh.f32 %v1215_v58 }
 0x261   : > { %v1310_v61 = vadd.f32 0.5, %v1278_v56  ;;  %v980_v62 = vpop.f32.mrf.mxu2 }
 0x262   : > { %v981_v63 = vadd.f32 %v2192_v50, %v980_v62 }
 0x263   : > { %v1634_v0 = vpack.c.bf16 %v1310_v61, %v1309_v59  ;;  %v1140_v1 = vpop.f32.mrf.mxu3 }
 0x264   : > { %v1029_v3 = vmax.f32 %v981_v63, 0.0  ;;  %v1141_v4 = vadd.f32 %v2246_v36, %v1140_v1 }
 0x265   : > { %1635 = vst [vmem:[%s2259_s28] sm:$0xff] %v1634_v0  }
 0x266   : > { %v1050_v5 = vpack.c.bf16 %v1029_v3, %v1028_v2  ;;  %v1216_v6 = vmul.f32 0.5, %v1141_v4  ;;  %v1775_v8 = vpop.eup %1774 }
 0x267   : > { %v1279_v11 = vmul.f32 0.5, %v1775_v8 }
 0x268   : > { %1776 = vtanh.f32 %v1216_v6  ;;  %1603 = vmatmul.msk.bf16.gmra.mxu3 %vm427_vm0, %v1050_v5 }
 0x269   : > { %v983_v7 = vpop.f32.mrf.mxu2  ;;  %v1311_v16 = vadd.f32 0.5, %v1279_v11 }
 0x26a   : > { %v984_v14 = vadd.f32 %v2192_v50, %v983_v7 }
 0x26b   : > { %v1143_v9 = vpop.f32.mrf.mxu3 }
 0x26c   : > { %v1144_v10 = vadd.f32 %v2246_v36, %v1143_v9  ;;  %v1030_v22 = vmax.f32 %v984_v14, 0.0 }
 0x26e   : > { %v1777_v12 = vpop.eup %1776  ;;  %v1217_v15 = vmul.f32 0.5, %v1144_v10 }
 0x26f   : > { %v1280_v13 = vmul.f32 0.5, %v1777_v12 }
 0x270   : > { %1778 = vtanh.f32 %v1217_v15 }
 0x271   : > { %v1312_v17 = vadd.f32 0.5, %v1280_v13  ;;  %v985_v18 = vpop.f32.mrf.mxu2 }
 0x272   : > { %v986_v19 = vadd.f32 %v2192_v50, %v985_v18 }
 0x273   : > { %v1639_v20 = vpack.c.bf16 %v1312_v17, %v1311_v16  ;;  %v1145_v21 = vpop.f32.mrf.mxu3 }
 0x274   : > { %v1031_v23 = vmax.f32 %v986_v19, 0.0  ;;  %v1146_v24 = vadd.f32 %v2246_v36, %v1145_v21 }
 0x275   : > { %1711 = vst [vmem:[%s2259_s28 + $0x8] sm:$0xff] %v1639_v20  }
 0x276   : > { %v1051_v25 = vpack.c.bf16 %v1031_v23, %v1030_v22  ;;  %v1218_v60 = vmul.f32 0.5, %v1146_v24  ;;  %v1779_v27 = vpop.eup %1778 }
 0x277   : > { %v1281_v30 = vmul.f32 0.5, %v1779_v27 }
 0x278   : > { %1780 = vtanh.f32 %v1218_v60  ;;  %1604 = vmatmul.msk.bf16.gmra.mxu3 %vm427_vm0, %v1051_v25 }
 0x279   : > { %v988_v26 = vpop.f32.mrf.mxu2  ;;  %v1313_v37 = vadd.f32 0.5, %v1281_v30 }
 0x27a   : > { %v989_v33 = vadd.f32 %v2192_v50, %v988_v26 }
 0x27b   : > { %v1148_v28 = vpop.f32.mrf.mxu3 }
 0x27c   : > { %v1149_v29 = vadd.f32 %v2246_v36, %v1148_v28  ;;  %v1032_v42 = vmax.f32 %v989_v33, 0.0 }
 0x27e   : > { %v1781_v31 = vpop.eup %1780  ;;  %v1219_v35 = vmul.f32 0.5, %v1149_v29 }
 0x27f   : > { %v1282_v32 = vmul.f32 0.5, %v1781_v31 }
 0x280   : > { %1782 = vtanh.f32 %v1219_v35 }
 0x281   : > { %v1314_v38 = vadd.f32 0.5, %v1282_v32  ;;  %v990_v34 = vpop.f32.mrf.mxu2 }
 0x282   : > { %v991_v39 = vadd.f32 %v2192_v50, %v990_v34 }
 0x283   : > { %v1644_v40 = vpack.c.bf16 %v1314_v38, %v1313_v37  ;;  %v1150_v41 = vpop.f32.mrf.mxu3 }
 0x284   : > { %v1033_v43 = vmax.f32 %v991_v39, 0.0  ;;  %v1151_v44 = vadd.f32 %v2246_v36, %v1150_v41 }
 0x285   : > { %1712 = vst [vmem:[%s2259_s28 + $0x10] sm:$0xff] %v1644_v40  }
 0x286   : > { %v1052_v45 = vpack.c.bf16 %v1033_v43, %v1032_v42  ;;  %v1220_v46 = vmul.f32 0.5, %v1151_v44  ;;  %v1783_v48 = vpop.eup %1782 }
 0x287   : > { %v1283_v52 = vmul.f32 0.5, %v1783_v48 }
 0x288   : > { %1784 = vtanh.f32 %v1220_v46  ;;  %1605 = vmatmul.msk.bf16.gmra.mxu3 %vm427_vm0, %v1052_v45 }
 0x289   : > { %v993_v47 = vpop.f32.mrf.mxu2  ;;  %v1315_v57 = vadd.f32 0.5, %v1283_v52 }
 0x28a   : > { %v994_v55 = vadd.f32 %v2192_v50, %v993_v47 }
 0x28b   : > { %v1153_v49 = vpop.f32.mrf.mxu3 }
 0x28c   : > { %v1154_v51 = vadd.f32 %v2246_v36, %v1153_v49  ;;  %v1034_v0 = vmax.f32 %v994_v55, 0.0 }
 0x28e   : > { %v1785_v53 = vpop.eup %1784  ;;  %v1221_v56 = vmul.f32 0.5, %v1154_v51 }
 0x28f   : > { %v1284_v54 = vmul.f32 0.5, %v1785_v53 }
 0x290   : > { %1786 = vtanh.f32 %v1221_v56 }
 0x291   : > { %v1316_v58 = vadd.f32 0.5, %v1284_v54  ;;  %v995_v59 = vpop.f32.mrf.mxu2 }
 0x292   : > { %v996_v61 = vadd.f32 %v2192_v50, %v995_v59 }
 0x293   : > { %v1649_v62 = vpack.c.bf16 %v1316_v58, %v1315_v57  ;;  %v1155_v63 = vpop.f32.mrf.mxu3 }
 0x294   : > { %v1035_v1 = vmax.f32 %v996_v61, 0.0  ;;  %v1156_v2 = vadd.f32 %v2246_v36, %v1155_v63 }
 0x295   : > { %1713 = vst [vmem:[%s2259_s28 + $0x18] sm:$0xff] %v1649_v62  }
 0x296   : > { %v1053_v3 = vpack.c.bf16 %v1035_v1, %v1034_v0  ;;  %v1222_v4 = vmul.f32 0.5, %v1156_v2  ;;  %v1787_v6 = vpop.eup %1786 }
 0x297   : > { %v1285_v9 = vmul.f32 0.5, %v1787_v6 }
 0x298   : > { %1788 = vtanh.f32 %v1222_v4  ;;  %1606 = vmatmul.msk.bf16.gmra.mxu3 %vm427_vm0, %v1053_v3 }
 0x299   : > { %v998_v5 = vpop.f32.mrf.mxu2  ;;  %v1317_v14 = vadd.f32 0.5, %v1285_v9 }
 0x29a   : > { %v999_v12 = vadd.f32 %v2192_v50, %v998_v5 }
 0x29b   : > { %v1158_v7 = vpop.f32.mrf.mxu3 }
 0x29c   : > { %v1159_v8 = vadd.f32 %v2246_v36, %v1158_v7  ;;  %v1036_v20 = vmax.f32 %v999_v12, 0.0 }
 0x29e   : > { %v1789_v10 = vpop.eup %1788  ;;  %v1223_v13 = vmul.f32 0.5, %v1159_v8 }
 0x29f   : > { %v1286_v11 = vmul.f32 0.5, %v1789_v10 }
 0x2a0   : > { %1790 = vtanh.f32 %v1223_v13 }
 0x2a1   : > { %v1318_v15 = vadd.f32 0.5, %v1286_v11  ;;  %v1000_v16 = vpop.f32.mrf.mxu2 }
 0x2a2   : > { %v1001_v17 = vadd.f32 %v2192_v50, %v1000_v16 }
 0x2a3   : > { %v1654_v18 = vpack.c.bf16 %v1318_v15, %v1317_v14  ;;  %v1160_v19 = vpop.f32.mrf.mxu3 }
 0x2a4   : > { %v1037_v21 = vmax.f32 %v1001_v17, 0.0  ;;  %v1161_v22 = vadd.f32 %v2246_v36, %v1160_v19 }
 0x2a5   : > { %1714 = vst [vmem:[%s2259_s28 + $0x20] sm:$0xff] %v1654_v18  }
 0x2a6   : > { %v1054_v23 = vpack.c.bf16 %v1037_v21, %v1036_v20  ;;  %v1224_v24 = vmul.f32 0.5, %v1161_v22  ;;  %v1791_v60 = vpop.eup %1790 }
 0x2a7   : > { %v1287_v28 = vmul.f32 0.5, %v1791_v60 }
 0x2a8   : > { %1792 = vtanh.f32 %v1224_v24  ;;  %1607 = vmatmul.msk.bf16.gmra.mxu3 %vm427_vm0, %v1054_v23 }
 0x2a9   : > { %v1003_v25 = vpop.f32.mrf.mxu2  ;;  %v1319_v33 = vadd.f32 0.5, %v1287_v28 }
 0x2aa   : > { %v1004_v31 = vadd.f32 %v2192_v50, %v1003_v25 }
 0x2ab   : > { %v1163_v26 = vpop.f32.mrf.mxu3 }
 0x2ac   : > { %v1164_v27 = vadd.f32 %v2246_v36, %v1163_v26  ;;  %v1038_v40 = vmax.f32 %v1004_v31, 0.0 }
 0x2ae   : > { %v1793_v29 = vpop.eup %1792  ;;  %v1225_v32 = vmul.f32 0.5, %v1164_v27 }
 0x2af   : > { %v1288_v30 = vmul.f32 0.5, %v1793_v29 }
 0x2b0   : > { %1794 = vtanh.f32 %v1225_v32 }
 0x2b1   : > { %v1320_v35 = vadd.f32 0.5, %v1288_v30  ;;  %v1005_v37 = vpop.f32.mrf.mxu2 }
 0x2b2   : > { %v1006_v38 = vadd.f32 %v2192_v50, %v1005_v37 }
 0x2b3   : > { %v1659_v34 = vpack.c.bf16 %v1320_v35, %v1319_v33  ;;  %v1165_v39 = vpop.f32.mrf.mxu3 }
 0x2b4   : > { %v1039_v41 = vmax.f32 %v1006_v38, 0.0  ;;  %v1166_v42 = vadd.f32 %v2246_v36, %v1165_v39 }
 0x2b5   : > { %1715 = vst [vmem:[%s2259_s28 + $0x28] sm:$0xff] %v1659_v34  }
 0x2b6   : > { %v1055_v43 = vpack.c.bf16 %v1039_v41, %v1038_v40  ;;  %v1226_v44 = vmul.f32 0.5, %v1166_v42  ;;  %v1795_v45 = vpop.eup %1794 }
 0x2b7   : > { %v1289_v48 = vmul.f32 0.5, %v1795_v45 }
 0x2b8   : > { %1796 = vtanh.f32 %v1226_v44  ;;  %1608 = vmatmul.msk.bf16.gmra.mxu3 %vm427_vm0, %v1055_v43 }
 0x2b9   : > { %v1321_v52 = vadd.f32 0.5, %v1289_v48 }
 0x2bb   : > { %v1168_v46 = vpop.f32.mrf.mxu3 }
 0x2bc   : > { %v1169_v47 = vadd.f32 %v2246_v36, %v1168_v46 }
 0x2be   : > { %v1797_v50 = vpop.eup %1796  ;;  %v1227_v51 = vmul.f32 0.5, %v1169_v47 }
 0x2bf   : > { %v1290_v49 = vmul.f32 0.5, %v1797_v50 }
 0x2c0   : > { %1798 = vtanh.f32 %v1227_v51 }
 0x2c1   : > { %v1322_v53 = vadd.f32 0.5, %v1290_v49 }
 0x2c3   : > { %v1664_v54 = vpack.c.bf16 %v1322_v53, %v1321_v52  ;;  %v1170_v55 = vpop.f32.mrf.mxu3 }
 0x2c4   : > { %v1171_v56 = vadd.f32 %v2246_v36, %v1170_v55 }
 0x2c5   : > { %1716 = vst [vmem:[%s2259_s28 + $0x30] sm:$0xff] %v1664_v54  }
 0x2c6   : > { %v1228_v57 = vmul.f32 0.5, %v1171_v56  ;;  %v1799_v58 = vpop.eup %1798 }
 0x2c7   : > { %v1291_v62 = vmul.f32 0.5, %v1799_v58 }
 0x2c8   : > { %1800 = vtanh.f32 %v1228_v57 }
 0x2c9   : > { %v1323_v2 = vadd.f32 0.5, %v1291_v62 }
 0x2cb   : > { %v1173_v59 = vpop.f32.mrf.mxu3 }
 0x2cc   : > { %v1174_v61 = vadd.f32 %v2246_v36, %v1173_v59 }
 0x2ce   : > { %v1801_v63 = vpop.eup %1800  ;;  %v1229_v1 = vmul.f32 0.5, %v1174_v61 }
 0x2cf   : > { %v1292_v0 = vmul.f32 0.5, %v1801_v63 }
 0x2d0   : > { %1802 = vtanh.f32 %v1229_v1 }
 0x2d1   : > { %v1324_v3 = vadd.f32 0.5, %v1292_v0 }
 0x2d3   : > { %v1669_v4 = vpack.c.bf16 %v1324_v3, %v1323_v2  ;;  %v1175_v5 = vpop.f32.mrf.mxu3 }
 0x2d4   : > { %v1176_v6 = vadd.f32 %v2246_v36, %v1175_v5 }
 0x2d5   : > { %1717 = vst [vmem:[%s2259_s28 + $0x38] sm:$0xff] %v1669_v4  }
 0x2d6   : > { %v1230_v7 = vmul.f32 0.5, %v1176_v6  ;;  %v1803_v8 = vpop.eup %1802 }
 0x2d7   : > { %v1293_v11 = vmul.f32 0.5, %v1803_v8 }
 0x2d8   : > { %1804 = vtanh.f32 %v1230_v7 }
 0x2d9   : > { %v1325_v15 = vadd.f32 0.5, %v1293_v11 }
 0x2db   : > { %v1178_v9 = vpop.f32.mrf.mxu3 }
 0x2dc   : > { %v1179_v10 = vadd.f32 %v2246_v36, %v1178_v9 }
 0x2de   : > { %v1805_v12 = vpop.eup %1804  ;;  %v1231_v14 = vmul.f32 0.5, %v1179_v10 }
 0x2df   : > { %v1294_v13 = vmul.f32 0.5, %v1805_v12 }
 0x2e0   : > { %1806 = vtanh.f32 %v1231_v14 }
 0x2e1   : > { %v1326_v16 = vadd.f32 0.5, %v1294_v13 }
 0x2e3   : > { %v1674_v17 = vpack.c.bf16 %v1326_v16, %v1325_v15  ;;  %v1180_v18 = vpop.f32.mrf.mxu3 }
 0x2e4   : > { %v1181_v19 = vadd.f32 %v2246_v36, %v1180_v18 }
 0x2e5   : > { %1718 = vst [vmem:[%s2259_s28 + $0x40] sm:$0xff] %v1674_v17  }
 0x2e6   : > { %v1232_v20 = vmul.f32 0.5, %v1181_v19  ;;  %v1807_v21 = vpop.eup %1806 }
 0x2e7   : > { %v1295_v24 = vmul.f32 0.5, %v1807_v21 }
 0x2e8   : > { %1808 = vtanh.f32 %v1232_v20 }
 0x2e9   : > { %v1327_v27 = vadd.f32 0.5, %v1295_v24 }
 0x2eb   : > { %v1183_v22 = vpop.f32.mrf.mxu3 }
 0x2ec   : > { %v1184_v23 = vadd.f32 %v2246_v36, %v1183_v22 }
 0x2ee   : > { %v1809_v25 = vpop.eup %1808  ;;  %v1233_v26 = vmul.f32 0.5, %v1184_v23 }
 0x2ef   : > { %v1296_v60 = vmul.f32 0.5, %v1809_v25 }
 0x2f0   : > { %1810 = vtanh.f32 %v1233_v26 }
 0x2f1   : > { %v1328_v28 = vadd.f32 0.5, %v1296_v60 }
 0x2f3   : > { %v1679_v29 = vpack.c.bf16 %v1328_v28, %v1327_v27  ;;  %v1185_v30 = vpop.f32.mrf.mxu3 }
 0x2f4   : > { %v1186_v31 = vadd.f32 %v2246_v36, %v1185_v30 }
 0x2f5   : > { %1719 = vst [vmem:[%s2259_s28 + $0x48] sm:$0xff] %v1679_v29  }
 0x2f6   : > { %v1234_v32 = vmul.f32 0.5, %v1186_v31  ;;  %v1811_v33 = vpop.eup %1810 }
 0x2f7   : > { %v1297_v38 = vmul.f32 0.5, %v1811_v33 }
 0x2f8   : > { %1812 = vtanh.f32 %v1234_v32 }
 0x2f9   : > { %v1329_v41 = vadd.f32 0.5, %v1297_v38 }
 0x2fb   : > { %v1188_v35 = vpop.f32.mrf.mxu3 }
 0x2fc   : > { %v1189_v37 = vadd.f32 %v2246_v36, %v1188_v35 }
 0x2fe   : > { %v1813_v34 = vpop.eup %1812  ;;  %v1235_v40 = vmul.f32 0.5, %v1189_v37 }
 0x2ff   : > { %v1298_v39 = vmul.f32 0.5, %v1813_v34 }
 0x300   : > { %1814 = vtanh.f32 %v1235_v40 }
 0x301   : > { %v1330_v42 = vadd.f32 0.5, %v1298_v39 }
 0x303   : > { %v1684_v43 = vpack.c.bf16 %v1330_v42, %v1329_v41  ;;  %v1190_v44 = vpop.f32.mrf.mxu3 }
 0x304   : > { %v1191_v45 = vadd.f32 %v2246_v36, %v1190_v44 }
 0x305   : > { %1720 = vst [vmem:[%s2259_s28 + $0x50] sm:$0xff] %v1684_v43  }
 0x306   : > { %v1236_v46 = vmul.f32 0.5, %v1191_v45  ;;  %v1815_v47 = vpop.eup %1814 }
 0x307   : > { %v1299_v49 = vmul.f32 0.5, %v1815_v47 }
 0x308   : > { %1816 = vtanh.f32 %v1236_v46 }
 0x309   : > { %v1331_v54 = vadd.f32 0.5, %v1299_v49 }
 0x30b   : > { %v1193_v48 = vpop.f32.mrf.mxu3 }
 0x30c   : > { %v1194_v50 = vadd.f32 %v2246_v36, %v1193_v48 }
 0x30e   : > { %v1817_v51 = vpop.eup %1816  ;;  %v1237_v53 = vmul.f32 0.5, %v1194_v50 }
 0x30f   : > { %v1300_v52 = vmul.f32 0.5, %v1817_v51 }
 0x310   : > { %1818 = vtanh.f32 %v1237_v53 }
 0x311   : > { %v1332_v55 = vadd.f32 0.5, %v1300_v52 }
 0x313   : > { %v1689_v56 = vpack.c.bf16 %v1332_v55, %v1331_v54  ;;  %v1195_v57 = vpop.f32.mrf.mxu3 }
 0x314   : > { %v1196_v58 = vadd.f32 %v2246_v36, %v1195_v57 }
 0x315   : > { %1721 = vst [vmem:[%s2259_s28 + $0x58] sm:$0xff] %v1689_v56  }
 0x316   : > { %v1238_v59 = vmul.f32 0.5, %v1196_v58  ;;  %v1819_v61 = vpop.eup %1818 }
 0x317   : > { %v1301_v0 = vmul.f32 0.5, %v1819_v61 }
 0x318   : > { %1820 = vtanh.f32 %v1238_v59 }
 0x319   : > { %v1333_v4 = vadd.f32 0.5, %v1301_v0 }
 0x31b   : > { %v1198_v62 = vpop.f32.mrf.mxu3 }
 0x31c   : > { %v1199_v63 = vadd.f32 %v2246_v36, %v1198_v62 }
 0x31e   : > { %v1821_v1 = vpop.eup %1820  ;;  %v1239_v3 = vmul.f32 0.5, %v1199_v63 }
 0x31f   : > { %v1302_v2 = vmul.f32 0.5, %v1821_v1 }
 0x320   : > { %1822 = vtanh.f32 %v1239_v3 }
 0x321   : > { %v1334_v5 = vadd.f32 0.5, %v1302_v2 }
 0x323   : > { %v1694_v6 = vpack.c.bf16 %v1334_v5, %v1333_v4  ;;  %v1200_v7 = vpop.f32.mrf.mxu3 }
 0x324   : > { %v1201_v8 = vadd.f32 %v2246_v36, %v1200_v7 }
 0x325   : > { %1722 = vst [vmem:[%s2259_s28 + $0x60] sm:$0xff] %v1694_v6  }
 0x326   : > { %v1240_v9 = vmul.f32 0.5, %v1201_v8  ;;  %v1823_v10 = vpop.eup %1822 }
 0x327   : > { %v1303_v13 = vmul.f32 0.5, %v1823_v10 }
 0x328   : > { %1824 = vtanh.f32 %v1240_v9 }
 0x329   : > { %v1335_v17 = vadd.f32 0.5, %v1303_v13 }
 0x32b   : > { %v1203_v11 = vpop.f32.mrf.mxu3 }
 0x32c   : > { %v1204_v12 = vadd.f32 %v2246_v36, %v1203_v11 }
 0x32e   : > { %v1825_v14 = vpop.eup %1824  ;;  %v1241_v16 = vmul.f32 0.5, %v1204_v12 }
 0x32f   : > { %v1304_v15 = vmul.f32 0.5, %v1825_v14 }
 0x330   : > { %1826 = vtanh.f32 %v1241_v16 }
 0x331   : > { %v1336_v18 = vadd.f32 0.5, %v1304_v15 }
 0x333   : > { %v1699_v19 = vpack.c.bf16 %v1336_v18, %v1335_v17  ;;  %v1205_v20 = vpop.f32.mrf.mxu3 }
 0x334   : > { %v1206_v21 = vadd.f32 %v2246_v36, %v1205_v20 }
 0x335   : > { %1723 = vst [vmem:[%s2259_s28 + $0x68] sm:$0xff] %v1699_v19  }
 0x336   : > { %v1242_v22 = vmul.f32 0.5, %v1206_v21  ;;  %v1827_v23 = vpop.eup %1826 }
 0x337   : > { %v1305_v60 = vmul.f32 0.5, %v1827_v23 }
 0x338   : > { %1828 = vtanh.f32 %v1242_v22 }
 0x339   : > { %v1337_v29 = vadd.f32 0.5, %v1305_v60 }
 0x33b   : > { %v1208_v24 = vpop.f32.mrf.mxu3 }
 0x33c   : > { %v1209_v25 = vadd.f32 %v2246_v36, %v1208_v24 }
 0x33e   : > { %v1829_v26 = vpop.eup %1828  ;;  %v1243_v28 = vmul.f32 0.5, %v1209_v25 }
 0x33f   : > { %v1306_v27 = vmul.f32 0.5, %v1829_v26 }
 0x340   : > { %1830 = vtanh.f32 %v1243_v28 }
 0x341   : > { %v1338_v30 = vadd.f32 0.5, %v1306_v27 }
 0x343   : > { %v1704_v31 = vpack.c.bf16 %v1338_v30, %v1337_v29  ;;  %v1210_v32 = vpop.f32.mrf.mxu3 }
 0x344   : > { %v1211_v33 = vadd.f32 %v2246_v36, %v1210_v32 }
 0x345   : > { %1724 = vst [vmem:[%s2259_s28 + $0x70] sm:$0xff] %v1704_v31  }
 0x346   : > { %v1244_v35 = vmul.f32 0.5, %v1211_v33  ;;  %v1831_v37 = vpop.eup %1830 }
 0x347   : > { %v1307_v38 = vmul.f32 0.5, %v1831_v37 }
 0x348   : > { %1832 = vtanh.f32 %v1244_v35 }
 0x349   : > { %v1339_v40 = vadd.f32 0.5, %v1307_v38 }
 0x34e   : > { %v1833_v34 = vpop.eup %1832 }
 0x34f   : > { %v1308_v39 = vmul.f32 0.5, %v1833_v34 }
 0x351   : > { %v1340_v41 = vadd.f32 0.5, %v1308_v39  ;;  %1412 = sbr.rel (!%p2000_p5) target bundleno = 886 (0x376), region = 60 }
 0x353   : > { %v1709_v42 = vpack.c.bf16 %v1340_v41, %v1339_v40 }
 0x355   : > { %1725 = vst [vmem:[%s2259_s28 + $0x78] sm:$0xff] %v1709_v42  }
 0x356   : > { %s2408_s16 = smov (!%p1415_p11, %s1414_s16), 32 }
 0x357   : > { %s1611_s17 = sshll.u32 %s2408_s16, 2 }
 0x358   : > { %s1418_s21 = ssub.s32 128, %s1611_s17 }
 0x359   : > { %s1419_s22 = sshll.u32 %s1418_s21, 4 }
 0x35a   : > { %1420 = vsyncadd %s2323_s29, %s1419_s22  ;;  %p2332_p12 = scmp.ne.s32.totalorder %s1611_s17, 0  ;;  %s1630_s19 = sshll.u32 %s1983_s13, 7 }
 0x35b   : > { %s1423_s26 = scalar_lea.hbm %s2393_s9, %s1630_s19  ;;  %s1425_s14 = sshll.u32 %s2259_s28, 4  ;;  %s2341_s14 = int_to_ptr.vmem [resolvable:$true] %s1425_s14 }
 0x35c   : > { %s1427_s27 = sshll.u32 %s1423_s26, 4  ;;  %s2394_s21 = sshll.u32 %s2408_s16, 6  ;;  %s2343_s27 = int_to_ptr.hbm [resolvable:$true] %s1427_s27 }
 0x35d   : > { %s1834_s22 = sshra.s32 %s2341_s14, 4  ;;  %s1836_s17 = sshrl.u32 %s2394_s21, 4  ;;  %s1835_s22 = int_to_ptr.vmem [resolvable:$true] %s1834_s22 }
 0x35e   : > { %s1841_s0 = scalar_lea.vmem %s1835_s22, %s1836_s17  ;;  %s1909_s13 = smov [#allocation2]  }
 0x35f   : > { %p1842_p13 = scmp.ne.s32.totalorder %s1835_s22, %s1841_s0  ;;  %s1845_s25 = scalar_lea.vmem %s1909_s13, 256 }
 0x360   : > { %p1847_p2 = scmp.lt.s32.totalorder %s1845_s25, %s1841_s0 }
 0x361   : > { %p1843_p0 = pnand %p1842_p13, %p2332_p12 }
 0x363   : > { %p1844_p1 = pneg %p1843_p0 }
 0x365   : > { %p1849_p3 = pnand %p1847_p2, %p1844_p1 }
 0x367   : > { %1852 = shalt.err (!%p1849_p3)
}
 0x368   : > { %s1853_s28 = sshra.s32 %s2343_s27, 4  ;;  %s1864_s22 = scalar_lea.hbm %s2393_s9, 252  ;;  %s1854_s28 = int_to_ptr.hbm [resolvable:$true] %s1853_s28 }
 0x369   : > { %s1860_s19 = scalar_lea.hbm %s1854_s28, %s1836_s17  ;;  %p1865_p8 = scmp.lt.s32.totalorder %s1854_s28, %s2393_s9 }
 0x36a   : > { %p1861_p4 = scmp.ne.s32.totalorder %s1854_s28, %s1860_s19  ;;  %p1866_p9 = scmp.lt.s32.totalorder %s1864_s22, %s1860_s19 }
 0x36c   : > { %p1862_p5 = pnand %p1861_p4, %p2332_p12  ;;  %p1867_p10 = por %p1866_p9, %p1865_p8 }
 0x36e   : > { %p1863_p7 = pneg %p1862_p5 }
 0x370   : > { %p1868_p11 = pnand %p1867_p10, %p1863_p7 }
 0x372   : > { %1871 = shalt.err (!%p1868_p11)
}
 0x373   : > { %s1910_s0 = smov 64   ;;  %s1911_s17 = smov 4  }
 0x374   : > { %s2402_s13 = sshll.u32 %s2408_s16, 6 }
 0x375   : > { %1433 = dma.vmem_to_hbm [thread:$0]  (%p2332_p12), %s2341_s14, %s2402_s13, %s2343_s27, %s2323_s29, %s1910_s0, %s1910_s0, %s1911_s17  }
 0x376 PF: > { %p1731_p13 = scmp.ge.s32.totalorder %s1907_s12, 2  ;;  %s1442_s1 = sand.u32 1, %s1895_s30  }
 0x377   : > { %s1443_s21 = scalar_lea.sflag [#allocation3], %s1442_s1 }
 0x378   : > { %p1728_p0 = pnand %p1731_p13, %p2004_p6 }
 0x37a   : > { %p1729_p1 = pneg %p1728_p0 }
 0x37c   : > { %1890 = dma.done.wait (%p1729_p1), %s1443_s21, 2048  }
 0x37d   : > { %1892 = vsyncadd (%p1729_p1), %s1443_s21, 4294965248  ;;  %p19_p2 = scmp.ge.s32.totalorder %s1987_s15, 4   ;;  %s2403_s30 = smov %s1899_s10 }
 0x37e   : > { %s2404_s10 = smov %s1903_s11  ;;  %s2405_s11 = smov %s1998_s18 }
 0x37f   : > { %s2406_s12 = smov %s1987_s15  ;;  %21 = sbr.rel (!%p19_p2) target bundleno = 6 (0x6), region = 91 }
 0x384   :  { %1449 = vsyncpa [#allocation3], 1 }
 0x385   :  { %1451 = vsyncpa [#allocation3 + $0x1], 1 }

</bundles_post_ra>
